<compile_context>
chip_gen: v7x
topology: tpu7x:2x2x1
jax: 0.10.0
libtpu: 0.0.40
codegen_flags: <defaults>
</compile_context>

<pallas_src>
import functools

import jax
import jax.numpy as jnp
import numpy as np
from jax.experimental import pallas as pl
from jax.experimental.pallas import tpu as pltpu


def _round_up(x, m):
    return ((x + m - 1) // m) * m


def _vmem_capacity_bytes():
    """Per-core VMEM capacity; conservative v7x default if the query fails."""
    try:
        info = pltpu.get_tpu_info()
        for attr in ("vmem_capacity_bytes", "vmem_bytes", "vmem_size_bytes"):
            v = getattr(info, attr, None)
            if v:
                return int(v)
    except Exception:
        pass
    return 64 * 1024 * 1024


_VMEM_CAP = _vmem_capacity_bytes()
# Scoped VMEM limit: most of the chip's VMEM, with headroom for the compiler.
VMEM_LIMIT = max(32 * 1024 * 1024,
                 min(int(_VMEM_CAP * 0.85), _VMEM_CAP - (8 << 20)))


def _pick_vocab_tile(D, V, b_pad=8):
    """Largest lane-dense vocab tile whose double-buffered W + out fit VMEM."""
    budget = int(_VMEM_CAP * 0.55)
    per_col = 2 * D * 2 + 2 * b_pad * 4     # 2x bf16 W bufs + 2x fp32 out bufs
    t = (budget // per_col) // 128 * 128
    t = max(128, min(t, 4096))
    return min(t, _round_up(V, 128))


# ----------------------------------------------------------------------------
# Kernel 1: tiled mean over the token axis of the patch tensor.
# pooled = mean_N(patches)  — pooling commutes with the linear projection, so
# the (much bigger) patch-embed matmul is deferred to kernel 2 and done once.
# ----------------------------------------------------------------------------
def _mean_pool_kernel(x_ref, o_ref, acc_ref, *, n_tokens, tn):
    # x_ref: [B, tn, P] bf16 patch tile; o_ref/acc_ref: [B, P] fp32
    t = pl.program_id(0)

    @pl.when(t == 0)
    def _():
        acc_ref[...] = jnp.zeros_like(acc_ref)

    # Mask the ragged token tail (grid uses cdiv, the last tile may extend
    # past N; the out-of-bounds rows of the VMEM buffer are undefined).
    tok = jax.lax.broadcasted_iota(jnp.int32, (1, tn, 1), 1) + t * tn
    x = jnp.where(tok < n_tokens, x_ref[...].astype(jnp.float32), 0.0)
    acc_ref[...] += jnp.sum(x, axis=1)

    @pl.when(t == pl.num_programs(0) - 1)
    def _():
        o_ref[...] = acc_ref[...] * (1.0 / n_tokens)


def mean_pool(patches, max_tn=512):
    """patches: [B, N, P] bf16 -> [B, P] fp32 (mean over N)."""
    B, N, P = patches.shape
    tn = N if N <= max_tn else max_tn           # max_tn is a multiple of 8
    grid = (pl.cdiv(N, tn),)
    kernel = functools.partial(_mean_pool_kernel, n_tokens=N, tn=tn)
    return pl.pallas_call(
        kernel,
        out_shape=jax.ShapeDtypeStruct((B, P), jnp.float32),
        grid_spec=pltpu.PrefetchScalarGridSpec(
            num_scalar_prefetch=0,
            grid=grid,
            in_specs=[pl.BlockSpec((B, tn, P), lambda t: (0, t, 0))],
            out_specs=pl.BlockSpec((B, P), lambda t: (0, 0)),
            scratch_shapes=[pltpu.VMEM((B, P), jnp.float32)],
        ),
        compiler_params=pltpu.CompilerParams(
            dimension_semantics=("arbitrary",),
            vmem_limit_bytes=VMEM_LIMIT,
        ),
    )(patches)


# ----------------------------------------------------------------------------
# Kernel 2: fused patch-embed projection + lm_head, streamed over vocab tiles.
#   logits[:, j] = ((pooled @ Wp) @ Wlm_tile_j)
# The tiny projection is recomputed per tile — it hides completely under the
# HBM stream of the lm_head weight and avoids a scratch-init hazard when the
# vocab axis is sharded across TensorCores.
# ----------------------------------------------------------------------------
def _proj_lm_head_kernel(h_ref, wp_ref, wl_ref, o_ref):
    # h_ref: [B_pad, P] bf16 (resident), wp_ref: [P, D] bf16 (resident)
    # wl_ref: [1, D, tile_v] bf16 vocab tile, o_ref: [B_pad, tile_v] fp32
    emb = jnp.dot(h_ref[...], wp_ref[...], preferred_element_type=jnp.float32)
    o_ref[...] = jnp.dot(emb.astype(jnp.bfloat16), wl_ref[0],
                         preferred_element_type=jnp.float32)


def proj_lm_head(pooled, w_patch, w_lm_tiles, vocab):
    """pooled: [B_pad, P] bf16, w_patch: [P, D] bf16,
    w_lm_tiles: [nV, D, tile_v] bf16 -> [B_pad, vocab] fp32."""
    B_pad, P = pooled.shape
    _, D = w_patch.shape
    nV, _, tile_v = w_lm_tiles.shape
    V_pad = nV * tile_v
    out = pl.pallas_call(
        _proj_lm_head_kernel,
        out_shape=jax.ShapeDtypeStruct((B_pad, V_pad), jnp.float32),
        grid_spec=pltpu.PrefetchScalarGridSpec(
            num_scalar_prefetch=0,
            grid=(nV,),
            in_specs=[
                pl.BlockSpec((B_pad, P), lambda j: (0, 0)),
                pl.BlockSpec((P, D), lambda j: (0, 0)),
                pl.BlockSpec((1, D, tile_v), lambda j: (j, 0, 0)),
            ],
            out_specs=pl.BlockSpec((B_pad, tile_v), lambda j: (0, j)),
        ),
        compiler_params=pltpu.CompilerParams(
            dimension_semantics=("parallel",),
            vmem_limit_bytes=VMEM_LIMIT,
        ),
    )(pooled, w_patch, w_lm_tiles)
    return out[:, :vocab]


# ----------------------------------------------------------------------------
# Glue: patch extraction (reshape/transpose only, bf16)
# ----------------------------------------------------------------------------
def extract_patches(x_bchw, patch):
    # TODO(synk): fold this reshape/transpose into the pool kernel's index_map
    # over an (hp, wp) grid to save the extra HBM pass for very large images.
    B, C, H, W = x_bchw.shape
    hp, wp = H // patch, W // patch
    x = x_bchw.reshape(B, C, hp, patch, wp, patch)
    x = jnp.transpose(x, (0, 2, 4, 1, 3, 5))      # [B, hp, wp, C, p, p]
    return x.reshape(B, hp * wp, C * patch * patch)


# ----------------------------------------------------------------------------
# Wrapper mirroring VisionTowerWrapper.forward semantics
# ----------------------------------------------------------------------------
class VisionTowerWrapper:
    def __init__(self, patch, w_patch, w_lm_t, tile_v=None):
        self.patch = patch
        # One-time weight preprocessing (was per-call before):
        self.w_patch = jnp.asarray(w_patch, jnp.bfloat16)        # [P, D]
        P, D = self.w_patch.shape
        V = w_lm_t.shape[1]
        self.vocab = V
        self.tile_v = _pick_vocab_tile(D, V) if tile_v is None else tile_v
        V_pad = pl.cdiv(V, self.tile_v) * self.tile_v
        w = jnp.asarray(w_lm_t, jnp.bfloat16)                    # [D, V]
        if V_pad != V:
            w = jnp.pad(w, ((0, 0), (0, V_pad - V)))
        # Tile-major [nV, D, tile_v]: each vocab tile is one contiguous DMA.
        self.w_lm_tiles = jnp.transpose(
            w.reshape(D, V_pad // self.tile_v, self.tile_v), (1, 0, 2))
        self.grid_thw = None                                     # np.int [B,3]

    def __call__(self, x):
        assert self.grid_thw is not None, "`grid_thw` must be set before forward()"
        patch = self.patch
        P, D = self.w_patch.shape

        x = jnp.asarray(x, jnp.bfloat16)
        B, C, H, W = x.shape
        hp, wp = H // patch, W // patch
        N = hp * wp

        # CLS-vs-mean decision is host-side config (grid_thw is not traced),
        # exactly as in the torch wrapper.  Note: with the patch-embed hot
        # path there is no prepended CLS token, so N == 1 + h*w never holds
        # and the mean branch is taken (mirrors the original wrapper logic).
        expected_tokens = 1 + int(self.grid_thw[0, 1] * self.grid_thw[0, 2])
        if N == expected_tokens:
            # hidden[:, 0] — only the first patch of each image is needed.
            pooled = x[:, :, :patch, :patch].reshape(B, P).astype(jnp.float32)
        else:
            patches = extract_patches(x, patch)                  # [B, N, P] bf16
            pooled = mean_pool(patches)                          # [B, P] fp32

        # Pad batch to a full sublane (8) so lm_head stores are unmasked.
        B_pad = max(8, _round_up(B, 8))
        pooled = jnp.pad(pooled, ((0, B_pad - B), (0, 0))).astype(jnp.bfloat16)

        logits = proj_lm_head(pooled, self.w_patch, self.w_lm_tiles, self.vocab)
        return logits[:B].astype(jnp.float32)                    # logits.float()
        # TODO(synk): .requires_grad_(True) is a torch autograd flag; JAX
        # arrays are differentiable by construction, so it has no equivalent.


# ----------------------------------------------------------------------------
# Main
# ----------------------------------------------------------------------------
if __name__ == "__main__":
    key = jax.random.PRNGKey(0)
    k_x, k_wp, k_wl = jax.random.split(key, 3)

    # Small synthetic shapes consistent with the module's forward.
    B, C, H, W = 2, 4, 16, 16
    patch = 4
    D = 32            # vision / LM hidden size
    V = 160           # vocab size (deliberately NOT a multiple of the vocab tile)
    P = C * patch * patch
    N = (H // patch) * (W // patch)

    x = jax.random.normal(k_x, (B, C, H, W), dtype=jnp.float32)
    w_patch = jax.random.normal(k_wp, (P, D), dtype=jnp.float32) * 0.05
    w_lm_t = jax.random.normal(k_wl, (D, V), dtype=jnp.float32) * 0.05

    wrapper = VisionTowerWrapper(patch, w_patch, w_lm_t)
    # grid_thw = [t, h_patches, w_patches] per image (config, not traced data).
    wrapper.grid_thw = np.array([[1, H // patch, W // patch]] * B, dtype=np.int64)

    logits = jax.block_until_ready(wrapper(x))

    # Reference in plain JAX, mirroring the torch wrapper exactly
    # (project every patch, mean over tokens, lm_head; fp32 accumulation).
    patches_ref = extract_patches(x.astype(jnp.bfloat16), patch)
    hidden_ref = jnp.dot(
        patches_ref.reshape(B * N, P), w_patch.astype(jnp.bfloat16),
        preferred_element_type=jnp.float32,
    ).reshape(B, N, D)
    cls_ref = hidden_ref.mean(axis=1).astype(jnp.bfloat16)   # 17 != 16 -> mean branch
    logits_ref = jnp.dot(
        cls_ref, w_lm_t.astype(jnp.bfloat16), preferred_element_type=jnp.float32
    )

    assert logits.shape == (B, V), logits.shape
    assert logits.dtype == jnp.float32
    np.testing.assert_allclose(np.asarray(logits), np.asarray(logits_ref),
                               rtol=2e-2, atol=2e-2)
    print("KERNEL_OK")
</pallas_src>

<mosaic_0001>
module attributes {stable_mosaic.version = 11 : i64} {
  func.func @_mean_pool_kernel(%arg0: i32, %arg1: memref<2x16x64xbf16, #tpu.memory_space<vmem>>, %arg2: memref<2x64xf32, #tpu.memory_space<vmem>>, %arg3: memref<2x64xf32, #tpu.memory_space<vmem>>) attributes {dimension_semantics = [#tpu.dimension_semantics<arbitrary>], iteration_bounds = array<i64: 1>, scalar_prefetch = 0 : i64, scratch_operands = 1 : i64, tpu.core_type = #tpu.core_type<tc>, window_params = [{transform_indices = @transform_0, window_bounds = array<i64: 2, 16, 64>}, {pipeline_mode = #tpu.pipeline_mode<synchronous>, transform_indices = @transform_1, window_bounds = array<i64: 2, 64>}]} {
    %c0_i32 = arith.constant 0 : i32
    %0 = arith.cmpi eq, %arg0, %c0_i32 : i32
    %1 = arith.extui %0 : i1 to i32
    %c0_i32_0 = arith.constant 0 : i32
    %2 = arith.cmpi ne, %1, %c0_i32_0 : i32
    scf.if %2 {
      %cst_11 = arith.constant 0.000000e+00 : f32
      %22 = vector.broadcast %cst_11 : f32 to vector<2x64xf32>
      %c0_12 = arith.constant 0 : index
      %c0_13 = arith.constant 0 : index
      %23 = vector.load %arg3[%c0_12, %c0_13] : memref<2x64xf32, #tpu.memory_space<vmem>>, vector<2x64xf32>
      tpu.vector_store %arg3[%c0_12, %c0_13], %22 {strides = array<i32>} : memref<2x64xf32, #tpu.memory_space<vmem>>, vector<2x64xf32>,
    } else {
    }
    %3 = tpu.iota {dimensions = array<i32: 1>} : vector<1x16x1xi32>
    %c16_i32 = arith.constant 16 : i32
    %4 = arith.muli %arg0, %c16_i32 : i32
    %5 = vector.broadcast %4 : i32 to vector<1x16x1xi32>
    %6 = arith.addi %3, %5 : vector<1x16x1xi32>
    %c16_i32_1 = arith.constant 16 : i32
    %7 = vector.broadcast %c16_i32_1 : i32 to vector<1x16x1xi32>
    %8 = arith.cmpi slt, %6, %7 : vector<1x16x1xi32>
    %c0 = arith.constant 0 : index
    %c0_2 = arith.constant 0 : index
    %c0_3 = arith.constant 0 : index
    %9 = vector.load %arg1[%c0, %c0_2, %c0_3] : memref<2x16x64xbf16, #tpu.memory_space<vmem>>, vector<2x16x64xbf16>
    %10 = arith.extf %9 : vector<2x16x64xbf16> to vector<2x16x64xf32>
    %cst = arith.constant 0.000000e+00 : f32
    %11 = vector.shape_cast %8 : vector<1x16x1xi1> to vector<1x16x1xi1>
    %12 = vector.broadcast %11 : vector<1x16x1xi1> to vector<2x16x64xi1>
    %13 = vector.broadcast %cst : f32 to vector<2x16x64xf32>
    %14 = arith.select %12, %10, %13 : vector<2x16x64xi1>, vector<2x16x64xf32>
    %c0_4 = arith.constant 0 : index
    %c0_5 = arith.constant 0 : index
    %15 = vector.load %arg3[%c0_4, %c0_5] : memref<2x64xf32, #tpu.memory_space<vmem>>, vector<2x64xf32>
    %cst_6 = arith.constant dense<0.000000e+00> : vector<2x64xf32>
    %16 = vector.multi_reduction <add>, %14, %cst_6 [1] : vector<2x16x64xf32> to vector<2x64xf32>
    %17 = arith.addf %15, %16 : vector<2x64xf32>
    %c0_7 = arith.constant 0 : index
    %c0_8 = arith.constant 0 : index
    %18 = vector.load %arg3[%c0_7, %c0_8] : memref<2x64xf32, #tpu.memory_space<vmem>>, vector<2x64xf32>
    tpu.vector_store %arg3[%c0_7, %c0_8], %17 {strides = array<i32>} : memref<2x64xf32, #tpu.memory_space<vmem>>, vector<2x64xf32>,
    %c0_i32_9 = arith.constant 0 : i32
    %19 = arith.cmpi eq, %arg0, %c0_i32_9 : i32
    %20 = arith.extui %19 : i1 to i32
    %c0_i32_10 = arith.constant 0 : i32
    %21 = arith.cmpi ne, %20, %c0_i32_10 : i32
    scf.if %21 {
      %c0_11 = arith.constant 0 : index
      %c0_12 = arith.constant 0 : index
      %22 = vector.load %arg3[%c0_11, %c0_12] : memref<2x64xf32, #tpu.memory_space<vmem>>, vector<2x64xf32>
      %cst_13 = arith.constant 6.250000e-02 : f32
      %23 = vector.broadcast %cst_13 : f32 to vector<2x64xf32>
      %24 = arith.mulf %22, %23 : vector<2x64xf32>
      %c0_14 = arith.constant 0 : index
      %c0_15 = arith.constant 0 : index
      %25 = vector.load %arg2[%c0_14, %c0_15] : memref<2x64xf32, #tpu.memory_space<vmem>>, vector<2x64xf32>
      tpu.vector_store %arg2[%c0_14, %c0_15], %24 {strides = array<i32>} : memref<2x64xf32, #tpu.memory_space<vmem>>, vector<2x64xf32>,
    } else {
    }
    return
  }
  func.func @transform_0(%arg0: i32) -> (i32, i32, i32) {
    %c0_i32 = arith.constant 0 : i32
    %c0_i32_0 = arith.constant 0 : i32
    %c0_i32_1 = arith.constant 0 : i32
    return %c0_i32, %arg0, %c0_i32_0 : i32, i32, i32
  }
  func.func @transform_1(%arg0: i32) -> (i32, i32) {
    %c0_i32 = arith.constant 0 : i32
    %c0_i32_0 = arith.constant 0 : i32
    %c0_i32_1 = arith.constant 0 : i32
    return %c0_i32, %c0_i32_0 : i32, i32
  }
}

</mosaic_0001>

<bundles_post_ra>
// kernel: tpu_custom_call.1
= control target key start
LH: loop header
LB: loop body
LE: loop exit
PB: predicated region body
PF: predicated region fallthrough
CT: control target
= control target key end

     0   :  { %6 = vsyncpa [#allocation4], 0  ;;  %s207_s0 = inlined_call_operand.hbm [shape: bf16[2,16,64], index: 0, kind: input, shape index: {}]   ;;  %s208_s1 = inlined_call_operand.hbm [shape: f32[2,64], index: 1, kind: output, shape index: {}]  }
   0x1   :  { %7 = vsyncpa [#allocation5], 0  ;;  %s165_s6 = smov [#allocation3]   ;;  %s117_s10 = scalar_lea.hbm %s207_s0, 256 }
   0x2   :  { %s13_s7 = sshll.u32 %s165_s6, 4  ;;  %p118_p0 = scmp.ne.s32.totalorder %s207_s0, %s117_s10  ;;  %s14_s7 = int_to_ptr.vmem [resolvable:$true] %s13_s7 }
   0x3   :  { %p121_p1 = scmp.lt.u32.totalorder %s117_s10, %s207_s0 }
   0x5   :  { %p123_p2 = pnand %p121_p1, %p118_p0 }
   0x7   :  { %126 = shalt.err (!%p123_p2)
}
   0x8   :  { %s127_s15 = scalar_lea.vmem %s14_s7, 256  ;;  %p132_p4 = scmp.lt.s32.totalorder %s14_s7, %s14_s7 }
   0x9   :  { %p128_p3 = scmp.ne.s32.totalorder %s14_s7, %s127_s15  ;;  %p133_p5 = scmp.lt.s32.totalorder %s127_s15, %s127_s15 }
   0xb   :  { %p134_p6 = por %p133_p5, %p132_p4 }
   0xd   :  { %p135_p7 = pnand %p134_p6, %p128_p3 }
   0xf   :  { %138 = shalt.err (!%p135_p7)
}
  0x10   :  { %s166_s16 = smov 64   ;;  %s167_s17 = smov 4  }
  0x11   :  { %19 = dma.hbm_to_vmem [thread:$0]  %s207_s0, 256, %s14_s7, [#allocation4], %s166_s16, %s166_s16, %s167_s17  }
  0x12   :  { %161 = dma.done.wait [#allocation4], 256  }
  0x13   :  { %162 = vsyncadd [#allocation4], 4294967040  ;;  %vm27_vm0 = vcmask 517120   ;;  %v168_v0 = vmov 0.0   ;;  %v104_v1 = vld [vmem:[#allocation3] sm:$0xff]   ;;  %v111_v2 = vld [vmem:[#allocation3 + $0x8] sm:$0xff]  }
  0x14   :  { %28 = vst.msk [vmem:[#allocation2] sm:$0x3] %vm27_vm0, %v168_v0  ;;  %vm55_vm1 = vcmask 523264   ;;  %v105_v3 = vunpack.c.l.bf16 %v104_v1  ;;  %v106_v4 = vunpack.c.h.bf16 %v104_v1  ;;  %v109_v5 = vunpack.c.l.bf16 %v111_v2  ;;  %s169_s0 = smov [#allocation6]  }
  0x15   :  { %v110_v6 = vunpack.c.h.bf16 %v111_v2  ;;  %vm76_vm2 = vcmask 1041409   ;;  %s94_s20 = sshll.u32 %s169_s0, 4  ;;  %s95_s20 = int_to_ptr.vmem [resolvable:$true] %s94_s20 }
  0x16   :  { %v56_v7 = vsel %vm55_vm1, %v105_v3, 0.0  ;;  %v57_v8 = vsel %vm55_vm1, %v106_v4, 0.0  ;;  %v65_v9 = vsel %vm55_vm1, %v109_v5, 0.0  ;;  %s139_s21 = scalar_lea.vmem %s95_s20, 32  ;;  %p144_p9 = scmp.lt.s32.totalorder %s95_s20, %s95_s20 }
  0x17   :  { %v66_v10 = vsel %vm55_vm1, %v110_v6, 0.0  ;;  %v58_v11 = vadd.f32 %v57_v8, %v56_v7  ;;  %p140_p8 = scmp.ne.s32.totalorder %s95_s20, %s139_s21  ;;  %p145_p10 = scmp.lt.s32.totalorder %s139_s21, %s139_s21 }
  0x18   :  { %v67_v12 = vadd.f32 %v66_v10, %v65_v9 }
  0x19   :  { %v59_v13 = vrot.slane %v58_v11, 4  ;;  %p146_p11 = por %p145_p10, %p144_p9 }
  0x1a   :  { %v68_v14 = vrot.slane %v67_v12, 4 }
  0x1b   :  { %v60_v15 = vadd.f32 %v59_v13, %v58_v11  ;;  %v54_v23 = vld [vmem:[#allocation2] sm:$0x3]  ;;  %p147_p12 = pnand %p146_p11, %p140_p8 }
  0x1c   :  { %v69_v16 = vadd.f32 %v68_v14, %v67_v12 }
  0x1d   :  { %v61_v17 = vrot.slane %v60_v15, 2 }
  0x1e   :  { %v70_v18 = vrot.slane %v69_v16, 2 }
  0x1f   :  { %v62_v19 = vadd.f32 %v61_v17, %v60_v15 }
  0x20   :  { %v71_v20 = vadd.f32 %v70_v18, %v69_v16 }
  0x21   :  { %v63_v21 = vrot.slane %v62_v19, 1 }
  0x22   :  { %v72_v22 = vrot.slane %v71_v20, 1 }
  0x23   :  { %v64_v24 = vadd.f32 %v63_v21, %v62_v19 }
  0x24   :  { %v73_v25 = vadd.f32 %v72_v22, %v71_v20 }
  0x26   :  { %v77_v26 = vsel %vm76_vm2, %v73_v25, %v64_v24 }
  0x27   :  { %v79_v27 = vadd.f32 %v77_v26, %v54_v23 }
  0x29   :  { %81 = vst.msk [vmem:[#allocation2] sm:$0x3] %vm27_vm0, %v79_v27 }
  0x30   :  { %v85_v28 = vld [vmem:[#allocation2] sm:$0x3] }
  0x31   :  { %v86_v29 = vmul.f32 0.0625, %v85_v28 }
  0x33   :  { %87 = vst.msk [vmem:[#allocation6] sm:$0x3] %vm27_vm0, %v86_v29 }
  0x34   :  { %150 = shalt.err (!%p147_p12)
}
  0x35   :  { %s151_s24 = scalar_lea.hbm %s208_s1, 32 }
  0x36   :  { %p152_p13 = scmp.ne.s32.totalorder %s208_s1, %s151_s24  ;;  %p155_p0 = scmp.lt.u32.totalorder %s151_s24, %s208_s1 }
  0x38   :  { %p157_p1 = pnand %p155_p0, %p152_p13 }
  0x3a   :  { %160 = shalt.err (!%p157_p1)
}
  0x3b   :  { %97 = dma.vmem_to_hbm [thread:$0]  %s95_s20, 32, %s208_s1, [#allocation5]  }
  0x3c   :  { %163 = dma.done.wait [#allocation5], 32  }
  0x3d   :  { %164 = vsyncadd [#allocation5], 4294967264 }
  0x3e   :  { %101 = vsyncpa [#allocation4], 1 }
  0x3f   :  { %102 = vsyncpa [#allocation5], 1 }

</bundles_post_ra>
